<compile_context>
chip_gen: v5e
topology: v5e:2x2
jax: 0.10.0
libtpu: 0.0.40
codegen_flags: <defaults>
</compile_context>

<pallas_src>
import functools

import jax
import jax.numpy as jnp
from jax.experimental import pallas as pl
from jax.experimental.pallas import tpu as pltpu

INPUT_SIZE = 5
HIDDEN_1 = 16
HIDDEN_2 = 16
OUTPUT_SIZE = 1

LANE = 128            # TPU lane width; batch tiles must be a multiple of this.
DEFAULT_TB = 16384    # batch-tile columns; sweep 8192-32768 per generation.


def _round_up(n, m):
    return ((n + m - 1) // m) * m


def _cdiv(a, b):
    return -(-a // b)


def _default_use_bf16():
    """bf16 activations only where the VPU/EUP have native bf16 (v6e / v7x)."""
    try:
        kind = jax.devices()[0].device_kind.lower()
    except Exception:  # no device info -> safe f32 default
        return False
    return ("v6" in kind) or ("v7" in kind) or ("tpu7" in kind)


def _sigmoid(x):
    # sigmoid(x) = 0.5 * tanh(0.5 * x) + 0.5  -- a single EUP op per element
    # instead of exp + divide; tanh is exact enough that the f32 path still
    # matches the exp-form reference to ~1e-7.
    half = jnp.asarray(0.5, dtype=x.dtype)
    return half * jnp.tanh(half * x) + half


def _mlp_kernel(x_ref, w1_ref, b1_ref, w2_ref, b2_ref, w3_ref, b3_ref, o_ref,
                *, act_dtype):
    # x_ref: (INPUT_SIZE, TB); all activations are (features, TB) -> lane-dense.
    # Padded batch columns (b_pad > B) compute sigmoid(bias) garbage that the
    # wrapper slices away -- nothing here reduces over the lane axis.
    x = x_ref[...]

    # Layer 1: (16, 5) @ (5, TB) + (16, 1); f32 accumulate, activation in
    # act_dtype (bf16 on v6e/v7x halves EUP/VPU cost of the sigmoid).
    z1 = jnp.dot(w1_ref[...], x, preferred_element_type=jnp.float32) + b1_ref[...]
    h1 = _sigmoid(z1.astype(act_dtype))

    # Layer 2: (16, 16) @ (16, TB) + (16, 1).
    z2 = (jnp.dot(w2_ref[...], h1.astype(w2_ref.dtype),
                  preferred_element_type=jnp.float32)
          + b2_ref[...])
    h2 = _sigmoid(z2.astype(act_dtype))

    # Layer 3 (16 -> 1): VPU multiply + sublane reduction (MXU stays off);
    # the 16-term reduction accumulates in f32.
    prod = w3_ref[...].astype(h2.dtype) * h2
    logits = jnp.sum(prod, axis=0, keepdims=True, dtype=jnp.float32) + b3_ref[...]
    o_ref[...] = _sigmoid(logits).astype(o_ref.dtype)


def parity_model_forward(x, params, *, block_batch=DEFAULT_TB, use_bf16=None,
                         x_is_feature_major=False):
    """Forward pass.

    x: (B, INPUT_SIZE) float32 (or (INPUT_SIZE, B) if x_is_feature_major=True,
       which skips the wrapper-side transpose HBM pass entirely).
    Returns (B, OUTPUT_SIZE) float32.

    Note: for tiny batches the plain XLA path (`reference_forward`) is cheaper
    than any kernel launch; the Pallas path pays off once B is in the thousands.
    """
    if use_bf16 is None:
        use_bf16 = _default_use_bf16()
    in_dtype = jnp.bfloat16 if use_bf16 else jnp.float32
    act_dtype = jnp.bfloat16 if use_bf16 else jnp.float32

    if x_is_feature_major:
        B = x.shape[1]
        xt = x.astype(in_dtype)                          # (INPUT_SIZE, B)
    else:
        B = x.shape[0]
        # Cast BEFORE transposing so the transpose pass moves half the bytes
        # on the bf16 path; under jit the cast+transpose+pad fuse into one op.
        xt = x.astype(in_dtype).T                        # (INPUT_SIZE, B)

    # Batch tile: multiple of the 128-lane width, no bigger than the (padded)
    # batch, and clamped so the grid keeps >=2 steps when the batch allows it
    # (so ("parallel",) still shards across both v7x TensorCores).  Per-step
    # VMEM at TB=16384 is ~4-6 MiB (x/out double buffers + (16, TB)
    # intermediates), comfortably inside the 32 MiB scoped limit on every gen.
    b_lanes = _round_up(B, LANE)
    desired = max(LANE, _round_up(block_batch, LANE))
    half = _round_up(_cdiv(b_lanes, 2), LANE)
    tb = max(LANE, min(desired, half, b_lanes))
    b_pad = _round_up(B, tb)

    if b_pad != xt.shape[1]:
        xt = jnp.pad(xt, ((0, 0), (0, b_pad - xt.shape[1])))

    w1 = params["w1"].astype(in_dtype)
    w2 = params["w2"].astype(in_dtype)
    w3 = params["w3"].astype(in_dtype)
    b1 = params["b1"].astype(jnp.float32)
    b2 = params["b2"].astype(jnp.float32)
    b3 = params["b3"].astype(jnp.float32)

    grid = (b_pad // tb,)

    def resident(shape):
        # Same block every grid step -> stays VMEM-resident across the grid.
        return pl.BlockSpec(shape, lambda i: (0, 0))

    out = pl.pallas_call(
        functools.partial(_mlp_kernel, act_dtype=act_dtype),
        out_shape=jax.ShapeDtypeStruct((OUTPUT_SIZE, b_pad), jnp.float32),
        grid=grid,
        in_specs=[
            pl.BlockSpec((INPUT_SIZE, tb), lambda i: (0, i)),   # x tile
            resident((HIDDEN_1, INPUT_SIZE)),                   # w1
            resident((HIDDEN_1, 1)),                            # b1
            resident((HIDDEN_2, HIDDEN_1)),                     # w2
            resident((HIDDEN_2, 1)),                            # b2
            resident((HIDDEN_2, OUTPUT_SIZE)),                  # w3 (column)
            resident((OUTPUT_SIZE, 1)),                         # b3
        ],
        out_specs=pl.BlockSpec((OUTPUT_SIZE, tb), lambda i: (0, i)),
        compiler_params=pltpu.CompilerParams(
            dimension_semantics=("parallel",),   # shard batch across TCs (v7x)
            vmem_limit_bytes=32 * 1024 * 1024,   # safe on v5e/v6e/v7x
        ),
    )(xt, w1, b1, w2, b2, w3, b3)

    return out[:, :B].T                                  # (B, OUTPUT_SIZE)


def init_params(key):
    """nn.Linear-style init: U(-1/sqrt(fan_in), 1/sqrt(fan_in)).

    Weights are stored torch-style (out_features, in_features), biases as
    (out_features, 1) columns; w3 is stored as a (HIDDEN_2, OUTPUT_SIZE) column
    so layer 3 can be an elementwise multiply + reduce in the kernel.
    """
    def linear(k, fan_in, fan_out):
        kw, kb = jax.random.split(k)
        bound = 1.0 / jnp.sqrt(jnp.float32(fan_in))
        w = jax.random.uniform(kw, (fan_out, fan_in), jnp.float32, -bound, bound)
        b = jax.random.uniform(kb, (fan_out, 1), jnp.float32, -bound, bound)
        return w, b

    k1, k2, k3 = jax.random.split(key, 3)
    w1, b1 = linear(k1, INPUT_SIZE, HIDDEN_1)
    w2, b2 = linear(k2, HIDDEN_1, HIDDEN_2)
    w3, b3 = linear(k3, HIDDEN_2, OUTPUT_SIZE)
    return {"w1": w1, "b1": b1, "w2": w2, "b2": b2,
            "w3": w3.T, "b3": b3}   # w3 stored as (HIDDEN_2, OUTPUT_SIZE)


def reference_forward(x, params):
    """Pure-JAX reference matching the torch semantics (batch-major, f32)."""
    h = jax.nn.sigmoid(x @ params["w1"].T + params["b1"].T)
    h = jax.nn.sigmoid(h @ params["w2"].T + params["b2"].T)
    return jax.nn.sigmoid(h @ params["w3"] + params["b3"].T)


if __name__ == "__main__":
    key = jax.random.PRNGKey(0)
    kx, kp = jax.random.split(key)

    batch = 8
    x = jax.random.uniform(kx, (batch, INPUT_SIZE), jnp.float32)
    params = init_params(kp)

    fwd = jax.jit(
        parity_model_forward,
        static_argnames=("block_batch", "use_bf16", "x_is_feature_major"))

    ref = reference_forward(x, params)

    # Exact-precision path (f32 everywhere) -- tight tolerance.
    out_f32 = jax.block_until_ready(fwd(x, params, use_bf16=False))
    assert out_f32.shape == (batch, OUTPUT_SIZE)
    assert jnp.allclose(out_f32, ref, atol=1e-5, rtol=1e-5)

    # Device-default path (bf16 on v6e/v7x, f32 on v5e) -- looser tolerance
    # because bf16 weights/activations differ from the f32 reference by ~1e-2.
    out_auto = jax.block_until_ready(fwd(x, params))
    assert out_auto.shape == (batch, OUTPUT_SIZE)
    assert jnp.allclose(out_auto, ref, atol=3e-2, rtol=3e-2)

    # Feature-major entry point (skips the wrapper-side transpose HBM pass).
    out_fm = jax.block_until_ready(
        fwd(x.T, params, use_bf16=False, x_is_feature_major=True))
    assert jnp.allclose(out_fm, ref, atol=1e-5, rtol=1e-5)

    print("KERNEL_OK")
</pallas_src>

<mosaic_0001>
module attributes {stable_mosaic.version = 11 : i64} {
  func.func @_mlp_kernel(%arg0: i32, %arg1: memref<5x128xf32, #tpu.memory_space<vmem>>, %arg2: memref<16x5xf32, #tpu.memory_space<vmem>>, %arg3: memref<16x1xf32, #tpu.memory_space<vmem>>, %arg4: memref<16x16xf32, #tpu.memory_space<vmem>>, %arg5: memref<16x1xf32, #tpu.memory_space<vmem>>, %arg6: memref<16x1xf32, #tpu.memory_space<vmem>>, %arg7: memref<1x1xf32, #tpu.memory_space<vmem>>, %arg8: memref<1x128xf32, #tpu.memory_space<vmem>>) attributes {dimension_semantics = [#tpu.dimension_semantics<parallel>], iteration_bounds = array<i64: 1>, scalar_prefetch = 0 : i64, scratch_operands = 0 : i64, tpu.core_type = #tpu.core_type<tc>, window_params = [{transform_indices = @transform_0, window_bounds = array<i64: 5, 128>}, {pipeline_mode = #tpu.pipeline_mode<synchronous>, transform_indices = @transform_1, window_bounds = array<i64: 16, 5>}, {pipeline_mode = #tpu.pipeline_mode<synchronous>, transform_indices = @transform_2, window_bounds = array<i64: 16, 1>}, {pipeline_mode = #tpu.pipeline_mode<synchronous>, transform_indices = @transform_3, window_bounds = array<i64: 16, 16>}, {pipeline_mode = #tpu.pipeline_mode<synchronous>, transform_indices = @transform_4, window_bounds = array<i64: 16, 1>}, {pipeline_mode = #tpu.pipeline_mode<synchronous>, transform_indices = @transform_5, window_bounds = array<i64: 16, 1>}, {pipeline_mode = #tpu.pipeline_mode<synchronous>, transform_indices = @transform_6, window_bounds = array<i64: 1, 1>}, {transform_indices = @transform_7, window_bounds = array<i64: 1, 128>}]} {
    %c0 = arith.constant 0 : index
    %c0_0 = arith.constant 0 : index
    %0 = vector.load %arg1[%c0, %c0_0] : memref<5x128xf32, #tpu.memory_space<vmem>>, vector<5x128xf32>
    %c0_1 = arith.constant 0 : index
    %c0_2 = arith.constant 0 : index
    %1 = vector.load %arg2[%c0_1, %c0_2] : memref<16x5xf32, #tpu.memory_space<vmem>>, vector<16x5xf32>
    %cst = arith.constant dense<0.000000e+00> : vector<16x128xf32>
    %2 = tpu.matmul %1, %0, %cst {dimension_numbers = #tpu.dot_dimension_numbers<[1], [0], [0], [1], [0, 0, 1, 1], [], []>} : vector<16x5xf32>, vector<5x128xf32>, vector<16x128xf32> -> vector<16x128xf32>
    %c0_3 = arith.constant 0 : index
    %c0_4 = arith.constant 0 : index
    %3 = vector.load %arg3[%c0_3, %c0_4] : memref<16x1xf32, #tpu.memory_space<vmem>>, vector<16x1xf32>
    %4 = vector.broadcast %3 : vector<16x1xf32> to vector<16x128xf32>
    %5 = arith.addf %2, %4 : vector<16x128xf32>
    %cst_5 = arith.constant 5.000000e-01 : f32
    %6 = vector.broadcast %cst_5 : f32 to vector<16x128xf32>
    %7 = arith.mulf %6, %5 : vector<16x128xf32>
    %8 = math.tanh %7 : vector<16x128xf32>
    %cst_6 = arith.constant 5.000000e-01 : f32
    %9 = vector.broadcast %cst_6 : f32 to vector<16x128xf32>
    %10 = arith.mulf %9, %8 : vector<16x128xf32>
    %cst_7 = arith.constant 5.000000e-01 : f32
    %11 = vector.broadcast %cst_7 : f32 to vector<16x128xf32>
    %12 = arith.addf %10, %11 : vector<16x128xf32>
    %c0_8 = arith.constant 0 : index
    %c0_9 = arith.constant 0 : index
    %13 = vector.load %arg4[%c0_8, %c0_9] : memref<16x16xf32, #tpu.memory_space<vmem>>, vector<16x16xf32>
    %cst_10 = arith.constant dense<0.000000e+00> : vector<16x128xf32>
    %14 = tpu.matmul %13, %12, %cst_10 {dimension_numbers = #tpu.dot_dimension_numbers<[1], [0], [0], [1], [0, 0, 1, 1], [], []>} : vector<16x16xf32>, vector<16x128xf32>, vector<16x128xf32> -> vector<16x128xf32>
    %c0_11 = arith.constant 0 : index
    %c0_12 = arith.constant 0 : index
    %15 = vector.load %arg5[%c0_11, %c0_12] : memref<16x1xf32, #tpu.memory_space<vmem>>, vector<16x1xf32>
    %16 = vector.broadcast %15 : vector<16x1xf32> to vector<16x128xf32>
    %17 = arith.addf %14, %16 : vector<16x128xf32>
    %cst_13 = arith.constant 5.000000e-01 : f32
    %18 = vector.broadcast %cst_13 : f32 to vector<16x128xf32>
    %19 = arith.mulf %18, %17 : vector<16x128xf32>
    %20 = math.tanh %19 : vector<16x128xf32>
    %cst_14 = arith.constant 5.000000e-01 : f32
    %21 = vector.broadcast %cst_14 : f32 to vector<16x128xf32>
    %22 = arith.mulf %21, %20 : vector<16x128xf32>
    %cst_15 = arith.constant 5.000000e-01 : f32
    %23 = vector.broadcast %cst_15 : f32 to vector<16x128xf32>
    %24 = arith.addf %22, %23 : vector<16x128xf32>
    %c0_16 = arith.constant 0 : index
    %c0_17 = arith.constant 0 : index
    %25 = vector.load %arg6[%c0_16, %c0_17] : memref<16x1xf32, #tpu.memory_space<vmem>>, vector<16x1xf32>
    %26 = vector.broadcast %25 : vector<16x1xf32> to vector<16x128xf32>
    %27 = arith.mulf %26, %24 : vector<16x128xf32>
    %cst_18 = arith.constant dense<0.000000e+00> : vector<128xf32>
    %28 = vector.multi_reduction <add>, %27, %cst_18 [0] : vector<16x128xf32> to vector<128xf32>
    %29 = vector.shape_cast %28 : vector<128xf32> to vector<1x128xf32>
    %c0_19 = arith.constant 0 : index
    %c0_20 = arith.constant 0 : index
    %30 = vector.load %arg7[%c0_19, %c0_20] : memref<1x1xf32, #tpu.memory_space<vmem>>, vector<1x1xf32>
    %31 = vector.broadcast %30 : vector<1x1xf32> to vector<1x128xf32>
    %32 = arith.addf %29, %31 : vector<1x128xf32>
    %cst_21 = arith.constant 5.000000e-01 : f32
    %33 = vector.broadcast %cst_21 : f32 to vector<1x128xf32>
    %34 = arith.mulf %33, %32 : vector<1x128xf32>
    %35 = math.tanh %34 : vector<1x128xf32>
    %cst_22 = arith.constant 5.000000e-01 : f32
    %36 = vector.broadcast %cst_22 : f32 to vector<1x128xf32>
    %37 = arith.mulf %36, %35 : vector<1x128xf32>
    %cst_23 = arith.constant 5.000000e-01 : f32
    %38 = vector.broadcast %cst_23 : f32 to vector<1x128xf32>
    %39 = arith.addf %37, %38 : vector<1x128xf32>
    %c0_24 = arith.constant 0 : index
    %c0_25 = arith.constant 0 : index
    %40 = vector.load %arg8[%c0_24, %c0_25] : memref<1x128xf32, #tpu.memory_space<vmem>>, vector<1x128xf32>
    tpu.vector_store %arg8[%c0_24, %c0_25], %39 {strides = array<i32>} : memref<1x128xf32, #tpu.memory_space<vmem>>, vector<1x128xf32>,
    return
  }
  func.func @transform_0(%arg0: i32) -> (i32, i32) {
    %c0_i32 = arith.constant 0 : i32
    %c0_i32_0 = arith.constant 0 : i32
    return %c0_i32, %arg0 : i32, i32
  }
  func.func @transform_1(%arg0: i32) -> (i32, i32) {
    %c0_i32 = arith.constant 0 : i32
    %c0_i32_0 = arith.constant 0 : i32
    %c0_i32_1 = arith.constant 0 : i32
    return %c0_i32, %c0_i32_0 : i32, i32
  }
  func.func @transform_2(%arg0: i32) -> (i32, i32) {
    %c0_i32 = arith.constant 0 : i32
    %c0_i32_0 = arith.constant 0 : i32
    %c0_i32_1 = arith.constant 0 : i32
    return %c0_i32, %c0_i32_0 : i32, i32
  }
  func.func @transform_3(%arg0: i32) -> (i32, i32) {
    %c0_i32 = arith.constant 0 : i32
    %c0_i32_0 = arith.constant 0 : i32
    %c0_i32_1 = arith.constant 0 : i32
    return %c0_i32, %c0_i32_0 : i32, i32
  }
  func.func @transform_4(%arg0: i32) -> (i32, i32) {
    %c0_i32 = arith.constant 0 : i32
    %c0_i32_0 = arith.constant 0 : i32
    %c0_i32_1 = arith.constant 0 : i32
    return %c0_i32, %c0_i32_0 : i32, i32
  }
  func.func @transform_5(%arg0: i32) -> (i32, i32) {
    %c0_i32 = arith.constant 0 : i32
    %c0_i32_0 = arith.constant 0 : i32
    %c0_i32_1 = arith.constant 0 : i32
    return %c0_i32, %c0_i32_0 : i32, i32
  }
  func.func @transform_6(%arg0: i32) -> (i32, i32) {
    %c0_i32 = arith.constant 0 : i32
    %c0_i32_0 = arith.constant 0 : i32
    %c0_i32_1 = arith.constant 0 : i32
    return %c0_i32, %c0_i32_0 : i32, i32
  }
  func.func @transform_7(%arg0: i32) -> (i32, i32) {
    %c0_i32 = arith.constant 0 : i32
    %c0_i32_0 = arith.constant 0 : i32
    return %c0_i32, %arg0 : i32, i32
  }
}

</mosaic_0001>

<bundles_post_ra>
// kernel: parity_model_forward.1
= control target key start
LH: loop header
LB: loop body
LE: loop exit
PB: predicated region body
PF: predicated region fallthrough
CT: control target
= control target key end

     0   :  { %vm50_vm0 = vcmask 1044480   ;;  %vm43_vm1 = vcmask 39936   ;;  %v197_v0 = vmov 0   ;;  %vm99_vm2 = vcmask 130048   ;;  %s277_s2 = inlined_call_operand.vmem [shape: f32[16,1], index: 2, kind: input, shape index: {}]   ;;  %s278_s0 = inlined_call_operand.vmem [shape: f32[5,128], index: 0, kind: input, shape index: {}]   ;;  %s279_s1 = inlined_call_operand.vmem [shape: f32[16,5], index: 1, kind: input, shape index: {}]   ;;  %s280_s6 = inlined_call_operand.<no memory space> [shape: f32[1,1], index: 6, kind: input, shape index: {}]   ;;  %s281_s4 = inlined_call_operand.vmem [shape: f32[16,1], index: 4, kind: input, shape index: {}]   ;;  %s282_s5 = inlined_call_operand.vmem [shape: f32[16,1], index: 5, kind: input, shape index: {}]   ;;  %s283_s3 = inlined_call_operand.vmem [shape: f32[16,16], index: 3, kind: input, shape index: {}]   ;;  %s284_s7 = inlined_call_operand.vmem [shape: f32[1,128], index: 7, kind: output, shape index: {}]  }
   0x1   :  { %184 = vset.pattern.permute.xlu0 %v197_v0  ;;  %v32_v1 = vld [vmem:[%s277_s2 + $0x8] sm:$0xff]  ;;  %v28_v2 = vld [vmem:[%s278_s0] sm:$0x1f]  ;;  %v12_v4 = vstv %s280_s6  ;;  %185 = vset.pattern.permute.xlu1 %v197_v0 }
   0x2   :  { %v29_v3 = vld [vmem:[%s279_s1] sm:$0xff]  ;;  %40 = vperm.xlu0 %184, %v32_v1   ;;  %175 = vmatpush.msk.msra.mxu0 %vm50_vm0, %v28_v2  ;;  %v30_v5 = vld [vmem:[%s279_s1 + $0x8] sm:$0xff]  ;;  %13 = vst [vmem:[#allocation2] sm:$0x1] %v12_v4 }
   0x3   :  { %180 = vmatpush.msk.msra.mxu3 %vm50_vm0, %v28_v2  ;;  %176 = vmatmul.msk.f32.vlgmr.msra.gmra.mxu0 %vm43_vm1, %v29_v3  ;;  %v31_v6 = vld [vmem:[%s277_s2] sm:$0xff]  ;;  %v88_v12 = vld [vmem:[%s281_s4 + $0x8] sm:$0xff] }
   0x4   :  { %177 = vmatmul.msk.f32.vlgmr.msra.gmra.mxu3 %vm43_vm1, %v30_v5  ;;  %186 = vset.pattern.permute.xlu2 %v197_v0  ;;  %v87_v9 = vld [vmem:[%s281_s4] sm:$0xff]  ;;  %v138_v13 = vld [vmem:[%s282_s5 + $0x8] sm:$0xff] }
   0x5   :  { %v137_v10 = vld [vmem:[%s282_s5] sm:$0xff]  ;;  %91 = vperm.xlu1 %185, %v87_v9   ;;  %v86_v27 = vld [vmem:[%s283_s3 + $0x8] sm:$0xff] }
   0x6   :  { %141 = vperm.xlu2 %186, %v137_v10   ;;  %v85_v26 = vld [vmem:[%s283_s3] sm:$0xff] }
   0x9   :  { %v158_v7 = vld [vmem:[#allocation2] sm:$0x1] }
   0xa   :  { %35 = vperm.xlu0 %184, %v31_v6  }
   0xd   :  { %96 = vperm.xlu1 %185, %v88_v12  }
   0xe   :  { %146 = vperm.xlu2 %186, %v138_v13  }
  0x12   :  { %161 = vperm.xlu0 %184, %v158_v7  }
  0x60   :  { %v142_v37 = vpop.permute.xlu2 %141 }
  0x68   :  { %v147_v43 = vpop.permute.xlu2 %146 }
  0x74   :  { %v41_v8 = vpop.permute.xlu0 %40 }
  0x77   :  { %v92_v28 = vpop.permute.xlu1 %91 }
  0x7c   :  { %v36_v14 = vpop.permute.xlu0 %35 }
  0x7f   :  { %v97_v32 = vpop.permute.xlu1 %96 }
  0x80   :  { %v71_v11 = vpop.f32.mrf.mxu0 }
  0x81   :  { %v72_v15 = vadd.f32 %v71_v11, %v36_v14 }
  0x83   :  { %v77_v16 = vmul.f32 0.5, %v72_v15 }
  0x84   :  { %v162_v51 = vpop.permute.xlu0 %161 }
  0x85   :  { %187 = vtanh.f32 %v77_v16  ;;  %v164_v53 = vperm.slane %v162_v51, 0 }
  0x87   :  { %v74_v17 = vpop.f32.mrf.mxu3 }
  0x88   :  { %v75_v18 = vadd.f32 %v74_v17, %v41_v8 }
  0x8a   :  { %v78_v19 = vmul.f32 0.5, %v75_v18 }
  0x8b   :  { %v188_v20 = vpop.eup %187 }
  0x8c   :  { %189 = vtanh.f32 %v78_v19  ;;  %v81_v23 = vmul.f32 0.5, %v188_v20 }
  0x8e   :  { %v83_v25 = vadd.f32 0.5, %v81_v23 }
  0x92   :  { %v190_v21 = vpop.eup %189 }
  0x93   :  { %v82_v22 = vmul.f32 0.5, %v190_v21 }
  0x95   :  { %v84_v24 = vadd.f32 0.5, %v82_v22 }
  0x97   :  { %120 = vmatpush.msra.mxu1 %v84_v24  ;;  %181 = vmatpush.msra.mxu2 %v84_v24 }
  0x99   :  { %121 = vmatpush.msra.mxu1 %v83_v25  ;;  %182 = vmatpush.msra.mxu2 %v83_v25 }
  0x9a   :  { %178 = vmatmul.msk.f32.vlgmr.msra.gmra.mxu1 %vm99_vm2, %v85_v26  ;;  %179 = vmatmul.msk.f32.vlgmr.msra.gmra.mxu2 %vm99_vm2, %v86_v27 }
 0x117   :  { %v123_v29 = vpop.f32.mrf.mxu1 }
 0x118   :  { %v124_v30 = vadd.f32 %v123_v29, %v92_v28 }
 0x11a   :  { %v129_v31 = vmul.f32 0.5, %v124_v30 }
 0x11c   :  { %191 = vtanh.f32 %v129_v31 }
 0x11d   :  { %v126_v33 = vpop.f32.mrf.mxu2 }
 0x11e   :  { %v127_v34 = vadd.f32 %v126_v33, %v97_v32 }
 0x120   :  { %v130_v35 = vmul.f32 0.5, %v127_v34 }
 0x122   :  { %v192_v36 = vpop.eup %191  ;;  %193 = vtanh.f32 %v130_v35 }
 0x123   :  { %v133_v38 = vmul.f32 0.5, %v192_v36 }
 0x125   :  { %v135_v40 = vadd.f32 0.5, %v133_v38 }
 0x127   :  { %v149_v44 = vmul.f32 %v142_v37, %v135_v40 }
 0x128   :  { %v194_v39 = vpop.eup %193 }
 0x129   :  { %v134_v41 = vmul.f32 0.5, %v194_v39 }
 0x12b   :  { %v136_v42 = vadd.f32 0.5, %v134_v41 }
 0x12d   :  { %v150_v45 = vmul.f32 %v147_v43, %v136_v42 }
 0x12f   :  { %v151_v46 = vadd.f32 %v150_v45, %v149_v44 }
 0x131   :  { %v152_v47 = vrot.slane %v151_v46, 4 }
 0x133   :  { %v153_v48 = vadd.f32 %v152_v47, %v151_v46 }
 0x135   :  { %v154_v49 = vrot.slane %v153_v48, 2 }
 0x137   :  { %v155_v50 = vadd.f32 %v154_v49, %v153_v48 }
 0x139   :  { %v156_v52 = vrot.slane %v155_v50, 1 }
 0x13b   :  { %v157_v54 = vadd.f32 %v156_v52, %v155_v50 }
 0x13d   :  { %v165_v55 = vadd.f32 %v164_v53, %v157_v54 }
 0x13f   :  { %v166_v56 = vmul.f32 0.5, %v165_v55 }
 0x141   :  { %195 = vtanh.f32 %v166_v56 }
 0x147   :  { %v196_v57 = vpop.eup %195 }
 0x148   :  { %v168_v58 = vmul.f32 0.5, %v196_v57 }
 0x14a   :  { %v169_v59 = vadd.f32 0.5, %v168_v58 }
 0x14c   :  { %170 = vst [vmem:[%s284_s7] sm:$0x1] %v169_v59 }

</bundles_post_ra>
